<compile_context>
chip_gen: v6e
topology: v6e:2x2x1
jax: 0.10.0
libtpu: 0.0.40
codegen_flags: <defaults>
</compile_context>

<pallas_src>
import functools
import math
from typing import NamedTuple

import jax
import jax.numpy as jnp
from jax.experimental import pallas as pl
from jax.experimental.pallas import tpu as pltpu

GAMMA = 0.99
ALPHA = 0.2
LOG2PI = math.log(2.0 * math.pi)
LOGP_EPS = 1e-6


# ------------------------------ static layout ------------------------------ #

class Layout(NamedTuple):
    obs: int
    act: int
    hid: int
    # data-slab columns
    d_nobs: int
    d_obs: int
    d_act: int
    d_ones: int
    d_rew: int
    d_done: int
    data_w: int
    # fused first-matmul output columns
    zt1: int
    zt2: int
    zc1: int
    zc2: int
    z_one: int      # constant-1 "carry" column (bias folding for later layers)
    z_actor: int
    z_end: int
    # packed-weight container row sections (starts aligned to bf16 16-row tile)
    r_w1: int
    r_act: int
    r_head: int
    r_out: int
    r_total: int


def _round_up(x, m):
    return ((x + m - 1) // m) * m


def make_layout(obs, act, hid):
    d_nobs, d_obs, d_act = 0, obs, 2 * obs
    d_ones = 2 * obs + act
    d_rew, d_done = d_ones + 1, d_ones + 2
    data_w = _round_up(d_done + 1, 128)            # lane-dense data slab width
    zt1, zt2, zc1, zc2 = 0, hid, 2 * hid, 3 * hid
    z_one = 4 * hid
    z_actor = z_one + 1
    z_end = z_actor + hid
    r_w1 = 0
    r_act = _round_up(r_w1 + data_w, 16)
    r_head = _round_up(r_act + act, 16)
    r_out = _round_up(r_head + hid + 1, 16)
    r_total = r_out + 4 * hid + 1
    return Layout(obs, act, hid, d_nobs, d_obs, d_act, d_ones, d_rew, d_done,
                  data_w, zt1, zt2, zc1, zc2, z_one, z_actor, z_end,
                  r_w1, r_act, r_head, r_out, r_total)


# ------------------------------- Pallas kernel ------------------------------ #

def sac_critic_loss_kernel(data_ref, w_ref, loss_ref, *, L, num_types):
    data = data_ref[...]                                   # [N, data_w] f32
    rew = data[:, L.d_rew:L.d_rew + 1]                     # exact f32
    done = data[:, L.d_done:L.d_done + 1]
    x = data.astype(jnp.bfloat16)                          # matmul operand

    # static slices of the single packed weight container (views are free)
    w1 = w_ref[0:L.data_w, :]                              # [data_w, z_end]
    w_act = w_ref[L.r_act:L.r_act + L.act, 0:L.z_one + 1]  # [act, 4*hid+1]
    w_head = w_ref[L.r_head:L.r_head + L.hid + 1, 0:2 * L.act]
    w_out = w_ref[L.r_out:L.r_out + 4 * L.hid + 1, 0:4]

    # --- fused matmul #1: Q "known" part, ones-carry, actor layer-1 ---
    z = jnp.dot(x, w1, preferred_element_type=jnp.float32)     # [N, z_end]

    # --- actor (frozen): deterministic tanh-Gaussian mean action + logp ---
    h_a = jnp.maximum(z[:, L.z_one:L.z_end], 0.0)              # [N, hid+1], col0 == 1
    mu_ls = jnp.dot(h_a.astype(jnp.bfloat16), w_head,
                    preferred_element_type=jnp.float32)        # [N, 2*act] = [mu|log_std]
    a_full = jnp.tanh(mu_ls)
    lane = jax.lax.broadcasted_iota(jnp.int32, mu_ls.shape, 1)
    term = jnp.where(
        lane < L.act,
        -jnp.log(1.0 - a_full * a_full + LOGP_EPS) - 0.5 * LOG2PI,   # mu lanes
        -jnp.clip(mu_ls, -5.0, 2.0))                                 # log_std lanes
    logp = jnp.sum(term, axis=-1, keepdims=True)                # [N, 1]
    next_act = a_full[:, 0:L.act].astype(jnp.bfloat16)          # [N, act]

    # --- all four Q heads (target + online), first layer + block-diag out ---
    hq = jnp.maximum(
        z[:, 0:L.z_one + 1]
        + jnp.dot(next_act, w_act, preferred_element_type=jnp.float32),
        0.0)                                                    # [N, 4*hid+1], last col == 1
    q_all = jnp.dot(hq.astype(jnp.bfloat16), w_out,
                    preferred_element_type=jnp.float32)         # [N, 4]
    qt1, qt2 = q_all[:, 0:1], q_all[:, 1:2]
    q1, q2 = q_all[:, 2:3], q_all[:, 3:4]

    # --- Bellman target + twin MSE; T*mean over T*B rows == sum of per-type means
    y = rew + GAMMA * (1.0 - done) * (jnp.minimum(qt1, qt2) - ALPHA * logp)
    d1 = q1 - y
    d2 = q2 - y
    scale = float(num_types) / float(data.shape[0])
    loss_ref[...] = scale * jnp.sum(d1 * d1 + d2 * d2, axis=0, keepdims=True)


# ------------------------- weight packing (hoistable) ----------------------- #

def pack_params(params, dtype=jnp.bfloat16):
    """Pack the 26 actor/critic arrays into ONE weight container + layout.

    Biases are folded into the matmuls (data ones column / ones-carry column),
    so the kernel never sees a sub-(8,128) bias tile nor adds a broadcast bias.

    NOTE: actor + target-Q weights are frozen inside this objective; in a real
    training loop this packing should be hoisted out of the per-step path and
    re-run only when the (online-critic) parameters change.
    """
    p = [x.astype(jnp.float32) for x in params]
    (wa1, ba1, wmu, bmu, wls, bls,
     t1_wo, t1_wa, t1_b, t1_wout, t1_bout,
     t2_wo, t2_wa, t2_b, t2_wout, t2_bout,
     c1_wo, c1_wa, c1_b, c1_wout, c1_bout,
     c2_wo, c2_wa, c2_b, c2_wout, c2_bout) = p

    obs, hid = wa1.shape
    act = wmu.shape[1]
    L = make_layout(obs, act, hid)

    w = jnp.zeros((L.r_total, L.z_end), jnp.float32)

    # fused first layer: [nobs | obs | act | 1] -> [qt1 qt2 q1 q2 hidden | 1 | actor hidden]
    w = w.at[L.d_nobs:L.d_nobs + obs, L.zt1:L.zt1 + hid].set(t1_wo)
    w = w.at[L.d_nobs:L.d_nobs + obs, L.zt2:L.zt2 + hid].set(t2_wo)
    w = w.at[L.d_nobs:L.d_nobs + obs, L.z_actor:L.z_actor + hid].set(wa1)
    w = w.at[L.d_obs:L.d_obs + obs, L.zc1:L.zc1 + hid].set(c1_wo)
    w = w.at[L.d_obs:L.d_obs + obs, L.zc2:L.zc2 + hid].set(c2_wo)
    w = w.at[L.d_act:L.d_act + act, L.zc1:L.zc1 + hid].set(c1_wa)
    w = w.at[L.d_act:L.d_act + act, L.zc2:L.zc2 + hid].set(c2_wa)
    ones_row = jnp.concatenate(
        [t1_b, t2_b, c1_b, c2_b, jnp.ones((1, 1), jnp.float32), ba1], axis=1)
    w = w.at[L.d_ones, :].set(ones_row[0])

    # target heads' action weights (applied to next_act, accumulated pre-ReLU)
    w = w.at[L.r_act:L.r_act + act, L.zt1:L.zt1 + hid].set(t1_wa)
    w = w.at[L.r_act:L.r_act + act, L.zt2:L.zt2 + hid].set(t2_wa)

    # actor (mu | log_std) head; row 0 = bias (hits the ones-carry column)
    head = jnp.concatenate(
        [jnp.concatenate([bmu, bls], axis=1),
         jnp.concatenate([wmu, wls], axis=1)], axis=0)          # [hid+1, 2*act]
    w = w.at[L.r_head:L.r_head + hid + 1, 0:2 * act].set(head)

    # block-diagonal Q output weights; last row = output bias
    w = w.at[L.r_out + L.zt1:L.r_out + L.zt1 + hid, 0:1].set(t1_wout)
    w = w.at[L.r_out + L.zt2:L.r_out + L.zt2 + hid, 1:2].set(t2_wout)
    w = w.at[L.r_out + L.zc1:L.r_out + L.zc1 + hid, 2:3].set(c1_wout)
    w = w.at[L.r_out + L.zc2:L.r_out + L.zc2 + hid, 3:4].set(c2_wout)
    bout = jnp.concatenate([t1_bout, t2_bout, c1_bout, c2_bout], axis=1)
    w = w.at[L.r_out + 4 * hid, 0:4].set(bout[0])

    return w.astype(dtype), L


def pack_batch(batch, types, L):
    """Fold batch types into rows; pack all row data into one [N, 128] slab."""
    def cat(key):
        return jnp.concatenate(
            [batch[bt][key] for bt in types], axis=0).astype(jnp.float32)

    nobs, obs, act = cat("next_obs"), cat("obs"), cat("act")
    rew, done = cat("rew"), cat("done")
    n = nobs.shape[0]
    ones = jnp.ones((n, 1), jnp.float32)
    pad = jnp.zeros((n, L.data_w - (L.d_done + 1)), jnp.float32)
    return jnp.concatenate([nobs, obs, act, ones, rew, done, pad], axis=-1)


# -------------------------------- JAX wrapper -------------------------------- #

def sac_critic_objective(batch, w_packed, *, layout):
    """batch: {'real': {...}, 'dream': {...}} each with obs/act/rew/done/next_obs.
    w_packed: output of pack_params (frozen packing hoisted out of the step).
    Returns (loss, dict(loss=loss)) with loss as a jnp scalar (jit-friendly)."""
    L = layout
    types = [bt for bt in ("real", "dream") if batch.get(bt) is not None]
    num_types = len(types)
    assert num_types > 0
    # The T*mean rescale needs equal per-type batch size (always true for this module).
    assert len({int(batch[bt]["obs"].shape[0]) for bt in types}) == 1

    data = pack_batch(batch, types, L)                 # [T*B, data_w] f32
    n = data.shape[0]

    flops = 2 * n * (L.data_w * L.z_end + L.act * (L.z_one + 1)
                     + (L.hid + 1) * 2 * L.act + (4 * L.hid + 1) * 4)
    cost = pl.CostEstimate(
        flops=flops,
        transcendentals=n * 4 * L.act,
        bytes_accessed=data.size * 4 + w_packed.size * w_packed.dtype.itemsize + 4)

    kernel = functools.partial(sac_critic_loss_kernel, L=L, num_types=num_types)

    # TODO(synk): for production batch sizes add a parallel row grid over the
    # [N, data_w] slab (dimension_semantics=("parallel",), row blocks sized to
    # v7x's 64 MiB VMEM) so v7x's second TensorCore is used; at N=16 the
    # per-step grid overhead exceeds the compute, so the kernel stays grid-less.
    loss = pl.pallas_call(
        kernel,
        out_shape=jax.ShapeDtypeStruct((1, 1), jnp.float32),
        in_specs=[pl.BlockSpec(memory_space=pltpu.MemorySpace.VMEM),
                  pl.BlockSpec(memory_space=pltpu.MemorySpace.VMEM)],
        out_specs=pl.BlockSpec(memory_space=pltpu.MemorySpace.VMEM),
        cost_estimate=cost,
    )(data, w_packed)

    loss_scalar = loss[0, 0]
    # TODO(synk): trainer.freeze_params is an autograd no-grad context (no
    # forward-value effect); torch's loss.item() host sync is left to the caller.
    return loss_scalar, dict(loss=loss_scalar)


# --------------------------- deterministic parameters ------------------------ #

def init_params(key, obs_dim, act_dim, hidden):
    keys = iter(jax.random.split(key, 32))

    def w(shape, scale=0.2):
        return (scale * jax.random.normal(next(keys), shape)).astype(jnp.float32)

    params = [
        w((obs_dim, hidden)), w((1, hidden)),   # actor layer 1
        w((hidden, act_dim)), w((1, act_dim)),  # actor mu head
        w((hidden, act_dim)), w((1, act_dim)),  # actor log_std head
    ]
    # target Q1, target Q2, online Q1, online Q2
    for _ in range(4):
        params += [
            w((obs_dim, hidden)), w((act_dim, hidden)), w((1, hidden)),
            w((hidden, 1)), w((1, 1)),
        ]
    return params


# ----------------------------- plain-JAX reference --------------------------- #

def _ref_q(o, a, wo, wa, b, wout, bout):
    h = jnp.maximum(o @ wo + a @ wa + b, 0.0)
    return h @ wout + bout


def ref_critic_loss(d, p):
    (wa1, ba1, wmu, bmu, wls, bls,
     t1_wo, t1_wa, t1_b, t1_wout, t1_bout,
     t2_wo, t2_wa, t2_b, t2_wout, t2_bout,
     c1_wo, c1_wa, c1_b, c1_wout, c1_bout,
     c2_wo, c2_wa, c2_b, c2_wout, c2_bout) = p
    h = jnp.maximum(d["next_obs"] @ wa1 + ba1, 0.0)
    mu = h @ wmu + bmu
    log_std = jnp.clip(h @ wls + bls, -5.0, 2.0)
    na = jnp.tanh(mu)
    logp = jnp.sum(-log_std - 0.5 * LOG2PI - jnp.log(1.0 - na * na + LOGP_EPS),
                   axis=-1, keepdims=True)
    qt1 = _ref_q(d["next_obs"], na, t1_wo, t1_wa, t1_b, t1_wout, t1_bout)
    qt2 = _ref_q(d["next_obs"], na, t2_wo, t2_wa, t2_b, t2_wout, t2_bout)
    y = d["rew"] + GAMMA * (1.0 - d["done"]) * (jnp.minimum(qt1, qt2) - ALPHA * logp)
    q1 = _ref_q(d["obs"], d["act"], c1_wo, c1_wa, c1_b, c1_wout, c1_bout)
    q2 = _ref_q(d["obs"], d["act"], c2_wo, c2_wa, c2_b, c2_wout, c2_bout)
    return jnp.mean((q1 - y) ** 2) + jnp.mean((q2 - y) ** 2)


def ref_objective(batch, params):
    total = 0.0
    for bt in ("real", "dream"):
        if batch.get(bt) is not None:
            total = total + ref_critic_loss(batch[bt], params)
    return total


# ------------------------------------ main ----------------------------------- #

if __name__ == "__main__":
    B, OBS, ACT, HID = 8, 32, 8, 32

    key = jax.random.PRNGKey(0)
    kp, kd = jax.random.split(key)
    params = init_params(kp, OBS, ACT, HID)

    def make_batch(k):
        k1, k2, k3, k4, k5 = jax.random.split(k, 5)
        return dict(
            obs=jax.random.normal(k1, (B, OBS), jnp.float32),
            act=jnp.tanh(jax.random.normal(k2, (B, ACT), jnp.float32)),
            rew=jax.random.normal(k3, (B, 1), jnp.float32),
            done=(jax.random.uniform(k4, (B, 1)) < 0.1).astype(jnp.float32),
            next_obs=jax.random.normal(k5, (B, OBS), jnp.float32),
        )

    k_real, k_dream = jax.random.split(kd)
    batch = dict(real=make_batch(k_real), dream=make_batch(k_dream))

    # Frozen-weight packing hoisted out of the (jitted) per-step path.
    w_packed, layout = pack_params(params)
    step = jax.jit(functools.partial(sac_critic_objective, layout=layout))

    loss, aux = step(batch, w_packed)
    jax.block_until_ready(loss)

    ref = float(ref_objective(batch, params))
    got = float(loss)
    # Matmul operands are bf16 (f32 accumulation), so compare against the pure
    # f32 reference with a correspondingly relaxed tolerance.
    assert abs(got - ref) <= 2e-2 * max(1.0, abs(ref)), (got, ref)

    print("KERNEL_OK")
</pallas_src>

<mosaic_0001>
module attributes {stable_mosaic.version = 11 : i64} {
  func.func @sac_critic_loss_kernel(%arg0: memref<16x128xf32, #tpu.memory_space<vmem>>, %arg1: memref<321x161xbf16, #tpu.memory_space<vmem>>, %arg2: memref<1x1xf32, #tpu.memory_space<vmem>>) attributes {dimension_semantics = [], scalar_prefetch = 0 : i64, scratch_operands = 0 : i64, tpu.core_type = #tpu.core_type<tc>} {
    %c0 = arith.constant 0 : index
    %c0_0 = arith.constant 0 : index
    %0 = vector.load %arg0[%c0, %c0_0] : memref<16x128xf32, #tpu.memory_space<vmem>>, vector<16x128xf32>
    %1 = vector.extract_strided_slice %0 {offsets = [0, 73], sizes = [16, 1], strides = [1, 1]} : vector<16x128xf32> to vector<16x1xf32>
    %2 = vector.extract_strided_slice %0 {offsets = [0, 74], sizes = [16, 1], strides = [1, 1]} : vector<16x128xf32> to vector<16x1xf32>
    %3 = arith.truncf %0 : vector<16x128xf32> to vector<16x128xbf16>
    %c0_1 = arith.constant 0 : index
    %c0_2 = arith.constant 0 : index
    %4 = vector.load %arg1[%c0_1, %c0_2] : memref<321x161xbf16, #tpu.memory_space<vmem>>, vector<128x161xbf16>
    %c128 = arith.constant 128 : index
    %c0_3 = arith.constant 0 : index
    %5 = vector.load %arg1[%c128, %c0_3] : memref<321x161xbf16, #tpu.memory_space<vmem>>, vector<8x129xbf16>
    %c144 = arith.constant 144 : index
    %c0_4 = arith.constant 0 : index
    %6 = vector.load %arg1[%c144, %c0_4] : memref<321x161xbf16, #tpu.memory_space<vmem>>, vector<33x16xbf16>
    %c192 = arith.constant 192 : index
    %c0_5 = arith.constant 0 : index
    %7 = vector.load %arg1[%c192, %c0_5] : memref<321x161xbf16, #tpu.memory_space<vmem>>, vector<129x4xbf16>
    %cst = arith.constant dense<0.000000e+00> : vector<16x161xf32>
    %8 = tpu.matmul %3, %4, %cst {dimension_numbers = #tpu.dot_dimension_numbers<[1], [0], [0], [1], [0, 0, 1, 1], [], []>} : vector<16x128xbf16>, vector<128x161xbf16>, vector<16x161xf32> -> vector<16x161xf32>
    %9 = vector.extract_strided_slice %8 {offsets = [0, 128], sizes = [16, 33], strides = [1, 1]} : vector<16x161xf32> to vector<16x33xf32>
    %cst_6 = arith.constant 0.000000e+00 : f32
    %10 = vector.broadcast %cst_6 : f32 to vector<16x33xf32>
    %11 = arith.maximumf %9, %10 : vector<16x33xf32>
    %12 = arith.truncf %11 : vector<16x33xf32> to vector<16x33xbf16>
    %cst_7 = arith.constant dense<0.000000e+00> : vector<16x16xf32>
    %13 = tpu.matmul %12, %6, %cst_7 {dimension_numbers = #tpu.dot_dimension_numbers<[1], [0], [0], [1], [0, 0, 1, 1], [], []>} : vector<16x33xbf16>, vector<33x16xbf16>, vector<16x16xf32> -> vector<16x16xf32>
    %14 = math.tanh %13 : vector<16x16xf32>
    %15 = tpu.iota {dimensions = array<i32: 1>} : vector<16x16xi32>
    %c8_i32 = arith.constant 8 : i32
    %16 = vector.broadcast %c8_i32 : i32 to vector<16x16xi32>
    %17 = arith.cmpi slt, %15, %16 : vector<16x16xi32>
    %18 = arith.mulf %14, %14 : vector<16x16xf32>
    %cst_8 = arith.constant 1.000000e+00 : f32
    %19 = vector.broadcast %cst_8 : f32 to vector<16x16xf32>
    %20 = arith.subf %19, %18 : vector<16x16xf32>
    %cst_9 = arith.constant 9.99999997E-7 : f32
    %21 = vector.broadcast %cst_9 : f32 to vector<16x16xf32>
    %22 = arith.addf %20, %21 : vector<16x16xf32>
    %23 = math.log %22 : vector<16x16xf32>
    %cst_10 = arith.constant 0.000000e+00 : f32
    %24 = vector.broadcast %cst_10 : f32 to vector<16x16xf32>
    %25 = arith.subf %24, %23 : vector<16x16xf32>
    %cst_11 = arith.constant 0.918938517 : f32
    %26 = vector.broadcast %cst_11 : f32 to vector<16x16xf32>
    %27 = arith.subf %25, %26 : vector<16x16xf32>
    %cst_12 = arith.constant -5.000000e+00 : f32
    %cst_13 = arith.constant 2.000000e+00 : f32
    %28 = vector.broadcast %cst_12 : f32 to vector<16x16xf32>
    %29 = arith.maximumf %28, %13 : vector<16x16xf32>
    %30 = vector.broadcast %cst_13 : f32 to vector<16x16xf32>
    %31 = arith.minimumf %30, %29 : vector<16x16xf32>
    %cst_14 = arith.constant 0.000000e+00 : f32
    %32 = vector.broadcast %cst_14 : f32 to vector<16x16xf32>
    %33 = arith.subf %32, %31 : vector<16x16xf32>
    %34 = arith.select %17, %27, %33 : vector<16x16xi1>, vector<16x16xf32>
    %cst_15 = arith.constant dense<0.000000e+00> : vector<16xf32>
    %35 = vector.multi_reduction <add>, %34, %cst_15 [1] : vector<16x16xf32> to vector<16xf32>
    %36 = vector.shape_cast %35 : vector<16xf32> to vector<16x1xf32>
    %37 = vector.extract_strided_slice %14 {offsets = [0, 0], sizes = [16, 8], strides = [1, 1]} : vector<16x16xf32> to vector<16x8xf32>
    %38 = arith.truncf %37 : vector<16x8xf32> to vector<16x8xbf16>
    %39 = vector.extract_strided_slice %8 {offsets = [0, 0], sizes = [16, 129], strides = [1, 1]} : vector<16x161xf32> to vector<16x129xf32>
    %cst_16 = arith.constant dense<0.000000e+00> : vector<16x129xf32>
    %40 = tpu.matmul %38, %5, %cst_16 {dimension_numbers = #tpu.dot_dimension_numbers<[1], [0], [0], [1], [0, 0, 1, 1], [], []>} : vector<16x8xbf16>, vector<8x129xbf16>, vector<16x129xf32> -> vector<16x129xf32>
    %41 = arith.addf %39, %40 : vector<16x129xf32>
    %cst_17 = arith.constant 0.000000e+00 : f32
    %42 = vector.broadcast %cst_17 : f32 to vector<16x129xf32>
    %43 = arith.maximumf %41, %42 : vector<16x129xf32>
    %44 = arith.truncf %43 : vector<16x129xf32> to vector<16x129xbf16>
    %cst_18 = arith.constant dense<0.000000e+00> : vector<16x4xf32>
    %45 = tpu.matmul %44, %7, %cst_18 {dimension_numbers = #tpu.dot_dimension_numbers<[1], [0], [0], [1], [0, 0, 1, 1], [], []>} : vector<16x129xbf16>, vector<129x4xbf16>, vector<16x4xf32> -> vector<16x4xf32>
    %46 = vector.extract_strided_slice %45 {offsets = [0, 0], sizes = [16, 1], strides = [1, 1]} : vector<16x4xf32> to vector<16x1xf32>
    %47 = vector.extract_strided_slice %45 {offsets = [0, 1], sizes = [16, 1], strides = [1, 1]} : vector<16x4xf32> to vector<16x1xf32>
    %48 = vector.extract_strided_slice %45 {offsets = [0, 2], sizes = [16, 1], strides = [1, 1]} : vector<16x4xf32> to vector<16x1xf32>
    %49 = vector.extract_strided_slice %45 {offsets = [0, 3], sizes = [16, 1], strides = [1, 1]} : vector<16x4xf32> to vector<16x1xf32>
    %cst_19 = arith.constant 1.000000e+00 : f32
    %50 = vector.broadcast %cst_19 : f32 to vector<16x1xf32>
    %51 = arith.subf %50, %2 : vector<16x1xf32>
    %cst_20 = arith.constant 9.900000e-01 : f32
    %52 = vector.broadcast %cst_20 : f32 to vector<16x1xf32>
    %53 = arith.mulf %52, %51 : vector<16x1xf32>
    %54 = arith.minimumf %46, %47 : vector<16x1xf32>
    %cst_21 = arith.constant 2.000000e-01 : f32
    %55 = vector.broadcast %cst_21 : f32 to vector<16x1xf32>
    %56 = arith.mulf %55, %36 : vector<16x1xf32>
    %57 = arith.subf %54, %56 : vector<16x1xf32>
    %58 = arith.mulf %53, %57 : vector<16x1xf32>
    %59 = arith.addf %1, %58 : vector<16x1xf32>
    %60 = arith.subf %48, %59 : vector<16x1xf32>
    %61 = arith.subf %49, %59 : vector<16x1xf32>
    %62 = arith.mulf %60, %60 : vector<16x1xf32>
    %63 = arith.mulf %61, %61 : vector<16x1xf32>
    %64 = arith.addf %62, %63 : vector<16x1xf32>
    %cst_22 = arith.constant dense<0.000000e+00> : vector<1xf32>
    %65 = vector.multi_reduction <add>, %64, %cst_22 [0] : vector<16x1xf32> to vector<1xf32>
    %66 = vector.shape_cast %65 : vector<1xf32> to vector<1x1xf32>
    %cst_23 = arith.constant 1.250000e-01 : f32
    %67 = vector.broadcast %cst_23 : f32 to vector<1x1xf32>
    %68 = arith.mulf %67, %66 : vector<1x1xf32>
    %c0_24 = arith.constant 0 : index
    %c0_25 = arith.constant 0 : index
    %69 = vector.load %arg2[%c0_24, %c0_25] : memref<1x1xf32, #tpu.memory_space<vmem>>, vector<1x1xf32>
    tpu.vector_store %arg2[%c0_24, %c0_25], %68 {strides = array<i32>} : memref<1x1xf32, #tpu.memory_space<vmem>>, vector<1x1xf32>,
    return
  }
}

</mosaic_0001>

<bundles_post_ra>
// kernel: sac_critic_objective.1
= control target key start
LH: loop header
LB: loop body
LE: loop exit
PB: predicated region body
PF: predicated region fallthrough
CT: control target
= control target key end

     0   :  { %v678_v2 = vmov 0   ;;  %s844_s0 = inlined_call_operand.vmem [shape: f32[16,128], index: 0, kind: input, shape index: {}]   ;;  %s845_s1 = inlined_call_operand.vmem [shape: bf16[321,161], index: 1, kind: input, shape index: {}]   ;;  %s846_s2 = inlined_call_operand.hbm [shape: f32[1,1], index: 2, kind: output, shape index: {}]  }
   0x1   :  { %v610_v0 = vld [vmem:[%s845_s1 + $0x74] ss:$8 sps:$4 sm:$0xff]   ;;  %v612_v1 = vld [vmem:[%s845_s1 + $0x70] ss:$8 sps:$4 sm:$0xff]   ;;  %167 = vmatprep.mubr.bf16.mxu0 %v678_v2  ;;  %330 = vmatprep.mubr.bf16.mxu1 %v678_v2  ;;  %v613_v3 = vld [vmem:[%s845_s1 + $0x64] ss:$8 sps:$4 sm:$0xff]  }
   0x2   :  { %135 = vmatprep.subr.bf16.mxu0 %v610_v0  ;;  %v615_v4 = vld [vmem:[%s845_s1 + $0x60] ss:$8 sps:$4 sm:$0xff]   ;;  %v616_v5 = vld [vmem:[%s845_s1 + $0x54] ss:$8 sps:$4 sm:$0xff]   ;;  %v618_v6 = vld [vmem:[%s845_s1 + $0x50] ss:$8 sps:$4 sm:$0xff]  }
   0x3   :  { %136 = vmatpush1.bf16.msra.mxu0 %v612_v1  ;;  %v619_v7 = vld [vmem:[%s845_s1 + $0x44] ss:$8 sps:$4 sm:$0xff]   ;;  %v621_v8 = vld [vmem:[%s845_s1 + $0x40] ss:$8 sps:$4 sm:$0xff]   ;;  %v622_v9 = vld [vmem:[%s845_s1 + $0x34] ss:$8 sps:$4 sm:$0xff]  }
   0x4   :  { %137 = vmatprep.subr.bf16.mxu0 %v613_v3  ;;  %v624_v10 = vld [vmem:[%s845_s1 + $0x30] ss:$8 sps:$4 sm:$0xff]   ;;  %v625_v11 = vld [vmem:[%s845_s1 + $0x24] ss:$8 sps:$4 sm:$0xff]  }
   0x7   :  { %138 = vmatpush1.bf16.msra.mxu0 %v615_v4 }
   0x8   :  { %139 = vmatprep.subr.bf16.mxu0 %v616_v5 }
   0xb   :  { %140 = vmatpush1.bf16.msra.mxu0 %v618_v6 }
   0xc   :  { %141 = vmatprep.subr.bf16.mxu0 %v619_v7 }
   0xf   :  { %142 = vmatpush1.bf16.msra.mxu0 %v621_v8 }
  0x10   :  { %143 = vmatprep.subr.bf16.mxu0 %v622_v9 }
  0x11   :  { %7 = vsyncpa [#allocation3], 0  ;;  %v627_v12 = vld [vmem:[%s845_s1 + $0x20] ss:$8 sps:$4 sm:$0xff]   ;;  %v628_v13 = vld [vmem:[%s845_s1 + $0x14] ss:$8 sps:$4 sm:$0xff]   ;;  %v249_v50 = vlaneseq }
  0x12   :  { %v630_v14 = vld [vmem:[%s845_s1 + $0x10] ss:$8 sps:$4 sm:$0xff]   ;;  %v631_v15 = vld [vmem:[%s845_s1 + $0x4] ss:$8 sps:$4 sm:$0xff]   ;;  %v633_v16 = vld [vmem:[%s845_s1] ss:$8 sps:$4 sm:$0xff]  }
  0x13   :  { %144 = vmatpush1.bf16.msra.mxu0 %v624_v10  ;;  %v755_v17 = vld [vmem:[%s844_s0] sm:$0xff]  ;;  %v760_v18 = vld [vmem:[%s844_s0 + $0x8] sm:$0xff]  ;;  %v679_v20 = vmov 0.0   ;;  %v634_v21 = vld [vmem:[%s845_s1 + $0xb0] ss:$0 sps:$4 sm:$0x11]  }
  0x14   :  { %145 = vmatprep.subr.bf16.mxu0 %v625_v11  ;;  %v15_v19 = vpack.c.bf16 %v760_v18, %v755_v17  ;;  %vm200_vm0 = vcmask 1040384   ;;  %v635_v24 = vld [vmem:[%s845_s1 + $0xa0] ss:$8 sps:$4 sm:$0xff]   ;;  %v636_v25 = vld [vmem:[%s845_s1 + $0x90] ss:$8 sps:$4 sm:$0xff]   ;;  %vm680_vm1 = vmmov 0  }
  0x15   :  { %v768_v22 = vsel %vm200_vm0, 65535, %v678_v2  ;;  %vm196_vm2 = vcmask 269312   ;;  %v32_v33 = vld [vmem:[%s845_s1 + $0x80] sm:$0xff]  ;;  %vm291_vm3 = vcmask 1043456   ;;  %vm287_vm4 = vcmask 64512   ;;  %s682_s14 = smov 74  }
  0x16   :  { %v204_v23 = vand.u32 %v634_v21, %v768_v22  ;;  %v574_v34 = vcombine.high %v32_v33, %v32_v33  ;;  %v573_v35 = vcombine.low %v32_v33, %v32_v33  ;;  %v250_v53 = vand.u32 127, %v249_v50  ;;  %v639_v7 = vld [vmem:[%s845_s1 + $0x130] ss:$8 sps:$4 sm:$0xff]   ;;  %v640_v8 = vld [vmem:[%s845_s1 + $0x120] ss:$8 sps:$4 sm:$0xff]   ;;  %s683_s15 = smov 58  }
  0x17   :  { %146 = vmatpush1.bf16.msra.mxu0 %v627_v12  ;;  %vm274_vm6 = vcmask 130048   ;;  %v641_v9 = vld [vmem:[%s845_s1 + $0x110] ss:$8 sps:$4 sm:$0xff]   ;;  %v642_v10 = vld [vmem:[%s845_s1 + $0x100] ss:$8 sps:$4 sm:$0xff]   ;;  %vm402_vm7 = vcmask 7168  }
  0x18   :  { %147 = vmatprep.subr.bf16.mxu0 %v628_v13  ;;  %575 = vmatprep.subr.msk.bf16.mxu1 %vm291_vm3, %v574_v34  ;;  %v293_v36 = vsel %vm291_vm3, %v573_v35, 0  ;;  %vm251_vm5 = vcmp.lt.s32.totalorder %v250_v53, 8  ;;  %v643_v11 = vld [vmem:[%s845_s1 + $0xf0] ss:$8 sps:$4 sm:$0xff]   ;;  %v644_v12 = vld [vmem:[%s845_s1 + $0xe0] ss:$8 sps:$4 sm:$0xff]  }
  0x19   :  { %313 = vmatpush1.bf16.msra.mxu1 %v293_v36  ;;  %v645_v13 = vld [vmem:[%s845_s1 + $0xd0] ss:$8 sps:$4 sm:$0xff]   ;;  %s684_s16 = smov 57   ;;  %vm520_vm8 = vcmask 23568   ;;  %s685_s17 = smov 126   ;;  %vm535_vm9 = vcmask 0  }
  0x1a   :  { %409 = vmatprep.subr.bf16.mxu1 %v678_v2  ;;  %s686_s18 = smov [#allocation2]  }
  0x1b   :  { %148 = vmatpush1.bf16.msra.mxu0 %v630_v14  ;;  %v646_v14 = vld [vmem:[%s845_s1 + $0xc0] ss:$8 sps:$4 sm:$0xff]   ;;  %s543_s0 = sshll.u32 %s686_s18, 4  ;;  %s544_s0 = int_to_ptr.vmem [resolvable:$true] %s543_s0 }
  0x1c   :  { %149 = vmatprep.subr.bf16.mxu0 %v631_v15  ;;  %v647_v15 = vld [vmem:[%s845_s1 + $0x140] ss:$0 sps:$4 sm:$0x11]   ;;  %s681_s1 = smov 127   ;;  %s656_s19 = scalar_lea.vmem %s544_s0, 16 }
  0x1d   :  { %p657_p0 = scmp.ne.s32.totalorder %s544_s0, %s656_s19  ;;  %s660_s20 = scalar_lea.vmem %s544_s0, 32 }
  0x1e   :  { %p661_p1 = scmp.lt.s32.totalorder %s544_s0, %s544_s0  ;;  %p662_p2 = scmp.lt.s32.totalorder %s660_s20, %s656_s19 }
  0x1f   :  { %150 = vmatpush1.bf16.msra.mxu0 %v633_v16  ;;  %v407_v16 = vand.u32 %v647_v15, %v768_v22 }
  0x20   :  { %591 = vmatprep.subr.bf16.mxu0 %v679_v20  ;;  %p663_p3 = por %p662_p2, %p661_p1 }
  0x22   :  { %168 = vmatmul.mubr.bf16.vlgmr.msra.gmra.mxu0 %v15_v19  ;;  %p664_p4 = pnand %p663_p3, %p657_p0 }
  0x23   :  { %592 = vmatpush3.bf16.msra.mxu0 %v204_v23  ;;  %597 = vmatprep.mubr.msk.bf16.mxu0 %vm680_vm1, %v679_v20 }
  0x24   :  { %593 = vmatprep.subr.bf16.mxu0 %v679_v20 }
  0x27   :  { %594 = vmatpush3.bf16.msra.mxu0 %v635_v24 }
  0x28   :  { %595 = vmatprep.subr.bf16.mxu0 %v679_v20 }
  0x2b   :  { %596 = vmatpush3.bf16.msra.mxu0 %v636_v25 }
  0xe2   :  { %v777_v26 = vpop.f32.mrf.mxu0 }
  0xe4   :  { %v779_v27 = vpop.f32.mrf.mxu0 }
  0xe5   :  { %v178_v30 = vmax.f32 %v779_v27, 0.0 }
  0xe6   :  { %v781_v28 = vpop.f32.mrf.mxu0 }
  0xe8   :  { %v783_v29 = vpop.f32.mrf.mxu0 }
  0xe9   :  { %v179_v31 = vmax.f32 %v783_v29, 0.0 }
  0xeb   :  { %v180_v32 = vpack.c.bf16 %v179_v31, %v178_v30 }
  0xed   :  { %598 = vmatmul.mubr.msk.bf16.vlgmr.msra.gmra.mxu0 %vm196_vm2, %v180_v32 }
 0x1ad   :  { %v240_v37 = vpop.f32.mrf.mxu0 }
 0x1ae   :  { %648 = vtanh.f32 %v240_v37  ;;  %v266_v51 = vmax.f32 %v240_v37, -5.0 }
 0x1af   :  { %v599_v38 = vpop.f32.mrf.mxu0 }
 0x1b0   :  { %v268_v54 = vmin.f32 %v266_v51, 2.0 }
 0x1b1   :  { %v243_v39 = vpop.f32.mrf.mxu0 }
 0x1b2   :  { %650 = vtanh.f32 %v243_v39  ;;  %v267_v55 = vmax.f32 %v243_v39, -5.0  ;;  %v270_v59 = vsub.f32 0.0, %v268_v54 }
 0x1b3   :  { %v600_v40 = vpop.f32.mrf.mxu0 }
 0x1b4   :  { %v269_v60 = vmin.f32 %v267_v55, 2.0 }
 0x1b6   :  { %v271_v3 = vsub.f32 0.0, %v269_v60 }
 0x1bb   :  { %v649_v41 = vpop.eup %648 }
 0x1bc   :  { %v252_v42 = vmul.f32 %v649_v41, %v649_v41 }
 0x1be   :  { %v254_v43 = vsub.f32 1.0, %v252_v42 }
 0x1bf   :  { %v651_v44 = vpop.eup %650 }
 0x1c0   :  { %v281_v45 = vpack.c.bf16 %v651_v44, %v649_v41  ;;  %v256_v46 = vadd.f32 1e-06, %v254_v43  ;;  %v253_v47 = vmul.f32 %v651_v44, %v651_v44 }
 0x1c2   :  { %576 = vmatmul.mubr.msk.bf16.vlgmr.msra.gmra.mxu1 %vm287_vm4, %v281_v45  ;;  %652 = vlog2.f32 %v256_v46  ;;  %v255_v48 = vsub.f32 1.0, %v253_v47  ;;  %v450_v46 = vsub.f32 1.0, %v755_v17 }
 0x1c3   :  { %410 = vmatpush1.bf16.msra.mxu1 %v639_v7 }
 0x1c4   :  { %v257_v49 = vadd.f32 1e-06, %v255_v48  ;;  %411 = vmatprep.subr.bf16.mxu1 %v678_v2  ;;  %v452_v47 = vmul.f32 0.99, %v450_v46  ;;  %v451_v48 = vsub.f32 1.0, %v760_v18 }
 0x1c6   :  { %654 = vlog2.f32 %v257_v49  ;;  %v453_v51 = vmul.f32 0.99, %v451_v48 }
 0x1c7   :  { %412 = vmatpush1.bf16.msra.mxu1 %v640_v8 }
 0x1c8   :  { %413 = vmatprep.subr.bf16.mxu1 %v678_v2 }
 0x1cb   :  { %414 = vmatpush1.bf16.msra.mxu1 %v641_v9 }
 0x1cc   :  { %415 = vmatprep.subr.bf16.mxu1 %v678_v2 }
 0x1cf   :  { %v653_v52 = vpop.eup %652  ;;  %416 = vmatpush1.bf16.msra.mxu1 %v642_v10 }
 0x1d0   :  { %v259_v56 = vmul.f32 0.6931472, %v653_v52  ;;  %417 = vmatprep.subr.bf16.mxu1 %v678_v2 }
 0x1d2   :  { %v262_v57 = vsub.f32 0.0, %v259_v56 }
 0x1d3   :  { %v655_v58 = vpop.eup %654  ;;  %418 = vmatpush1.bf16.msra.mxu1 %v643_v11 }
 0x1d4   :  { %v571_v61 = vadd.f32 -0.9189385, %v262_v57  ;;  %v261_v62 = vmul.f32 0.6931472, %v655_v58  ;;  %419 = vmatprep.subr.bf16.mxu1 %v678_v2 }
 0x1d6   :  { %v272_v63 = vsel %vm251_vm5, %v571_v61, %v270_v59  ;;  %v263_v0 = vsub.f32 0.0, %v261_v62 }
 0x1d7   :  { %v275_v1 = vsel %vm274_vm6, %v272_v63, 0.0  ;;  %420 = vmatpush1.bf16.msra.mxu1 %v644_v12 }
 0x1d8   :  { %276 = vadd.xlane.f32.xlu0 %v275_v1  ;;  %v572_v4 = vadd.f32 -0.9189385, %v263_v0  ;;  %421 = vmatprep.subr.bf16.mxu1 %v678_v2 }
 0x1da   :  { %v273_v5 = vsel %vm251_vm5, %v572_v4, %v271_v3 }
 0x1db   :  { %v278_v6 = vsel %vm274_vm6, %v273_v5, 0.0  ;;  %422 = vmatpush1.bf16.msra.mxu1 %v645_v13 }
 0x1dc   :  { %279 = vadd.xlane.f32.xlu0 %v278_v6  ;;  %423 = vmatprep.subr.bf16.mxu1 %v678_v2 }
 0x1df   :  { %424 = vmatpush1.bf16.msra.mxu1 %v646_v14 }
 0x1e0   :  { %439 = vmatprep.subr.bf16.mxu1 %v678_v2 }
 0x1e3   :  { %440 = vmatpush2.bf16.msra.mxu1 %v407_v16 }
 0x261   :  { %v277_v37 = vpop.xlane.xlu0 %276 }
 0x262   :  { %v464_v38 = vmul.f32 0.2, %v277_v37 }
 0x265   :  { %v280_v40 = vpop.xlane.xlu0 %279 }
 0x266   :  { %v465_v43 = vmul.f32 0.2, %v280_v40 }
 0x282   :  { %v332_v19 = vpop.f32.mrf.mxu1 }
 0x283   :  { %v341_v25 = vadd.f32 %v332_v19, %v777_v26 }
 0x284   :  { %v334_v20 = vpop.f32.mrf.mxu1 }
 0x285   :  { %v342_v23 = vadd.f32 %v334_v20, %v779_v27  ;;  %v345_v35 = vmax.f32 %v341_v25, 0.0 }
 0x286   :  { %v336_v21 = vpop.f32.mrf.mxu1 }
 0x287   :  { %v343_v24 = vadd.f32 %v336_v21, %v781_v28  ;;  %v346_v33 = vmax.f32 %v342_v23, 0.0 }
 0x288   :  { %v338_v30 = vpop.f32.mrf.mxu1 }
 0x289   :  { %v344_v31 = vadd.f32 %v338_v30, %v783_v29  ;;  %v347_v32 = vmax.f32 %v343_v24, 0.0 }
 0x28b   :  { %v348_v34 = vmax.f32 %v344_v31, 0.0  ;;  %v349_v22 = vpack.c.bf16 %v347_v32, %v345_v35 }
 0x28d   :  { %v350_v2 = vpack.c.bf16 %v348_v34, %v346_v33 }
 0x28f   :  { %586 = vmatprep.mubr.msk.bf16.mxu1 %vm402_vm7, %v350_v2 }
 0x290   :  { %442 = vmatmul.mubr.bf16.vlgmr.msra.gmra.mxu1 %v349_v22 }
 0x350   :  { %v443_v36 = vpop.f32.mrf.mxu1 }
 0x351   :  { %456 = vrot.lane.b32.xlu1 %v443_v36, %s681_s1 }
 0x352   :  { %v445_v27 = vpop.f32.mrf.mxu1 }
 0x354   :  { %v446_v28 = vpop.f32.mrf.mxu1 }
 0x355   :  { %458 = vrot.lane.b32.xlu1 %v446_v28, %s681_s1 }
 0x356   :  { %v448_v26 = vpop.f32.mrf.mxu1 }
 0x3c3   :  { %v457_v29 = vpop.permute.xlu1 %456 }
 0x3c4   :  { %v462_v39 = vmin.f32 %v443_v36, %v457_v29 }
 0x3c6   :  { %v466_v41 = vsub.f32 %v462_v39, %v464_v38 }
 0x3c7   :  { %v459_v42 = vpop.permute.xlu1 %458 }
 0x3c8   :  { %v463_v44 = vmin.f32 %v446_v28, %v459_v42  ;;  %470 = vrot.lane.b32.xlu0 %v466_v41, %s682_s14 }
 0x3ca   :  { %v467_v45 = vsub.f32 %v463_v44, %v465_v43 }
 0x3cc   :  { %472 = vrot.lane.b32.xlu1 %v467_v45, %s682_s14 }
 0x43a   :  { %v471_v49 = vpop.permute.xlu0 %470 }
 0x43b   :  { %v476_v50 = vmul.f32 %v471_v49, %v452_v47 }
 0x43d   :  { %480 = vrot.lane.b32.xlu1 %v476_v50, %s681_s1 }
 0x43e   :  { %v473_v52 = vpop.permute.xlu1 %472 }
 0x43f   :  { %v477_v53 = vmul.f32 %v473_v52, %v453_v51 }
 0x441   :  { %482 = vrot.lane.b32.xlu1 %v477_v53, %s681_s1 }
 0x4af   :  { %v481_v54 = vpop.permute.xlu1 %480 }
 0x4b0   :  { %v486_v55 = vadd.f32 %v481_v54, %v755_v17 }
 0x4b2   :  { %498 = vrot.lane.b32.xlu1 %v486_v55, %s683_s15 }
 0x4b3   :  { %v483_v56 = vpop.permute.xlu1 %482 }
 0x4b4   :  { %v487_v57 = vadd.f32 %v483_v56, %v760_v18 }
 0x4b6   :  { %492 = vrot.lane.b32.xlu0 %v487_v57, %s684_s16  ;;  %500 = vrot.lane.b32.xlu1 %v487_v57, %s683_s15 }
 0x4ba   :  { %490 = vrot.lane.b32.xlu1 %v486_v55, %s684_s16 }
 0x524   :  { %v499_v58 = vpop.permute.xlu1 %498 }
 0x525   :  { %v504_v59 = vsub.f32 %v443_v36, %v499_v58 }
 0x527   :  { %v508_v60 = vmul.f32 %v504_v59, %v504_v59 }
 0x528   :  { %v501_v61 = vpop.permute.xlu1 %500  ;;  %v493_v0 = vpop.permute.xlu0 %492 }
 0x529   :  { %v505_v62 = vsub.f32 %v446_v28, %v501_v61  ;;  %512 = vrot.lane.b32.xlu1 %v508_v60, %s681_s1  ;;  %v497_v3 = vsub.f32 %v446_v28, %v493_v0 }
 0x52b   :  { %v509_v63 = vmul.f32 %v505_v62, %v505_v62  ;;  %v507_v5 = vmul.f32 %v497_v3, %v497_v3 }
 0x52c   :  { %v491_v17 = vpop.permute.xlu1 %490 }
 0x52d   :  { %514 = vrot.lane.b32.xlu0 %v509_v63, %s681_s1  ;;  %v496_v1 = vsub.f32 %v443_v36, %v491_v17 }
 0x52f   :  { %v506_v18 = vmul.f32 %v496_v1, %v496_v1 }
 0x59b   :  { %v513_v4 = vpop.permute.xlu1 %512 }
 0x59c   :  { %v518_v6 = vadd.f32 %v513_v4, %v506_v18 }
 0x59e   :  { %v521_v9 = vsel %vm520_vm8, %v518_v6, 0.0 }
 0x59f   :  { %v515_v7 = vpop.permute.xlu0 %514 }
 0x5a0   :  { %v519_v8 = vadd.f32 %v515_v7, %v507_v5 }
 0x5a2   :  { %v522_v10 = vsel %vm520_vm8, %v519_v8, 0.0 }
 0x5a3   :  { %v523_v11 = vadd.f32 %v522_v10, %v521_v9 }
 0x5a5   :  { %v524_v12 = vrot.slane %v523_v11, 4 }
 0x5a7   :  { %v525_v13 = vadd.f32 %v524_v12, %v523_v11 }
 0x5a9   :  { %v526_v14 = vrot.slane %v525_v13, 2 }
 0x5ab   :  { %v527_v15 = vadd.f32 %v526_v14, %v525_v13 }
 0x5ad   :  { %v528_v16 = vrot.slane %v527_v15, 1 }
 0x5af   :  { %v529_v19 = vadd.f32 %v528_v16, %v527_v15 }
 0x5b1   :  { %v530_v20 = vmul.f32 0.125, %v529_v19 }
 0x5b3   :  { %532 = vrot.lane.b32.xlu1 %v530_v20, %s685_s17 }
 0x625   :  { %v533_v21 = vpop.permute.xlu1 %532 }
 0x626   :  { %536 = vst.msk [vmem:[#allocation2] sm:$0x1] %vm535_vm9, %v533_v21 }
 0x627   :  { %667 = shalt.err (!%p664_p4)
}
 0x628   :  { %546 = dma.vmem_to_hbm [thread:$0]  %s544_s0, 16, %s846_s2, [#allocation3]  }
 0x629   :  { %676 = dma.done.wait [#allocation3], 16  }
 0x62a   :  { %677 = vsyncadd [#allocation3], 4294967280 }
 0x62b   :  { %550 = vsyncpa [#allocation3], 1 }

</bundles_post_ra>
